<compile_context>
chip_gen: v6e
topology: v6e:2x2x1
jax: 0.10.0
libtpu: 0.0.40
codegen_flags: <defaults>
</compile_context>

<pallas_src>
import functools

import jax
import jax.numpy as jnp
from jax.experimental import pallas as pl
from jax.experimental.pallas import tpu as pltpu


def _simple_gc_kernel(m_ref, x_ref, o_ref):
    # m_ref : VMEM (CV, CV)      fused (adjacency x conv-weight) matrix, resident
    # x_ref : VMEM (1, CV, TT)   one batch element, one T tile (native-layout slab)
    # o_ref : VMEM (1, CV, TT)   output slab for the same (n, T-tile)
    o_ref[0, :, :] = jnp.dot(
        m_ref[...], x_ref[0, :, :], preferred_element_type=jnp.float32
    ).astype(o_ref.dtype)


def _pick_t_tile(t):
    for tt in (256, 128):
        if t % tt == 0:
            return tt
    return t  # block last dim equals the full array dim -> always a legal block


@functools.partial(jax.jit, static_argnames=("compute_dtype",))
def simple_gc(x, conv_weight, adj, *, compute_dtype=jnp.bfloat16):
    """x: (N, C, V, T), conv_weight: (V*C*K, C), adj: (K, V, V) -> (N, C, V, T) float32."""
    N, C, V, T = x.shape
    K = adj.shape[0]
    assert adj.shape == (K, V, V)
    assert conv_weight.shape == (V * C * K, C)
    CV = C * V

    # Fold adjacency into the grouped-conv weight (static-weight einsum, done in the wrapper).
    w4 = conv_weight.reshape(V, C, K, C).astype(jnp.float32)         # [w, c, k, d]
    m = jnp.einsum("kwv,wckd->cvdw", adj.astype(jnp.float32), w4)    # [c, v, d, w]
    m = m.reshape(CV, CV).astype(compute_dtype)                      # rows c*V+v, cols d*V+w

    # Free row-major views; no transposes, no extra HBM passes.
    x2 = x.reshape(N, CV, T).astype(compute_dtype)

    TT = _pick_t_tile(T)
    grid = (N, T // TT)

    # VMEM budget: resident M (x2 safety) + double-buffered bf16 input tiles + f32 output tiles.
    dsize = jnp.dtype(compute_dtype).itemsize
    vmem_bytes = 2 * dsize * CV * CV + 4 * dsize * CV * TT + 4 * 4 * CV * TT + (2 << 20)
    vmem_bytes = int(min(max(vmem_bytes, 16 << 20), 64 << 20))

    out2 = pl.pallas_call(
        _simple_gc_kernel,
        out_shape=jax.ShapeDtypeStruct((N, CV, T), jnp.float32),
        grid=grid,
        in_specs=[
            pl.BlockSpec((CV, CV), lambda n, t: (0, 0)),             # fused weight, resident
            pl.BlockSpec((1, CV, TT), lambda n, t: (n, 0, t)),       # x tile
        ],
        out_specs=pl.BlockSpec((1, CV, TT), lambda n, t: (n, 0, t)),
        compiler_params=pltpu.CompilerParams(
            dimension_semantics=("parallel", "parallel"),
            vmem_limit_bytes=vmem_bytes,
        ),
    )(m, x2)

    return out2.reshape(N, C, V, T)


def _reference(x, conv_weight, adj):
    """Pure-JAX reference mirroring the PyTorch forward."""
    N, C, V, T = x.shape
    K = adj.shape[0]
    w4 = conv_weight.reshape(V, C, K, C)                             # [w, c, k, d]
    y = jnp.einsum("wckd,ndwt->nckwt", w4, x)                        # grouped 1x1 conv
    return jnp.einsum("kwv,nckwt->ncvt", adj, y)                     # adjacency contraction


if __name__ == "__main__":
    key = jax.random.PRNGKey(0)
    N, C, V, T, K = 2, 4, 8, 16, 3

    k1, k2, k3 = jax.random.split(key, 3)
    x = jax.random.normal(k1, (N, C, V, T), dtype=jnp.float32)
    adj = jax.random.normal(k2, (K, V, V), dtype=jnp.float32)
    conv_w = jax.random.normal(k3, (V * C * K, C), dtype=jnp.float32) * 0.1

    ref = _reference(x, conv_w, adj)

    # Tight correctness check: f32 compute path.
    out_f32 = jax.block_until_ready(simple_gc(x, conv_w, adj, compute_dtype=jnp.float32))
    assert out_f32.shape == (N, C, V, T)
    assert jnp.allclose(out_f32, ref, atol=1e-4, rtol=1e-4), "f32 mismatch vs reference"

    # Fast path: bf16 operands on the MXU, f32 accumulate (looser tolerance for bf16 rounding).
    out_bf16 = jax.block_until_ready(simple_gc(x, conv_w, adj))
    assert out_bf16.shape == (N, C, V, T)
    assert jnp.allclose(out_bf16, ref, atol=5e-2, rtol=5e-2), "bf16 mismatch vs reference"

    print("KERNEL_OK")
</pallas_src>

<mosaic_0001>
module attributes {stable_mosaic.version = 11 : i64} {
  func.func @_simple_gc_kernel(%arg0: i32, %arg1: i32, %arg2: memref<32x32xf32, #tpu.memory_space<vmem>>, %arg3: memref<1x32x16xf32, #tpu.memory_space<vmem>>, %arg4: memref<1x32x16xf32, #tpu.memory_space<vmem>>) attributes {dimension_semantics = [#tpu.dimension_semantics<parallel>, #tpu.dimension_semantics<parallel>], iteration_bounds = array<i64: 2, 1>, scalar_prefetch = 0 : i64, scratch_operands = 0 : i64, tpu.core_type = #tpu.core_type<tc>, window_params = [{pipeline_mode = #tpu.pipeline_mode<synchronous>, transform_indices = @transform_0, window_bounds = array<i64: 32, 32>}, {transform_indices = @transform_1, window_bounds = array<i64: 1, 32, 16>}, {transform_indices = @transform_2, window_bounds = array<i64: 1, 32, 16>}]} {
    %c0 = arith.constant 0 : index
    %c0_0 = arith.constant 0 : index
    %0 = vector.load %arg2[%c0, %c0_0] : memref<32x32xf32, #tpu.memory_space<vmem>>, vector<32x32xf32>
    %c0_1 = arith.constant 0 : index
    %c0_2 = arith.constant 0 : index
    %c0_3 = arith.constant 0 : index
    %1 = vector.load %arg3[%c0_1, %c0_2, %c0_3] : memref<1x32x16xf32, #tpu.memory_space<vmem>>, vector<1x32x16xf32>
    %2 = vector.shape_cast %1 : vector<1x32x16xf32> to vector<32x16xf32>
    %cst = arith.constant dense<0.000000e+00> : vector<32x16xf32>
    %3 = tpu.matmul %0, %2, %cst {dimension_numbers = #tpu.dot_dimension_numbers<[1], [0], [0], [1], [0, 0, 1, 1], [], []>} : vector<32x32xf32>, vector<32x16xf32>, vector<32x16xf32> -> vector<32x16xf32>
    %c0_4 = arith.constant 0 : index
    %c0_5 = arith.constant 0 : index
    %c0_6 = arith.constant 0 : index
    %4 = vector.load %arg4[%c0_4, %c0_5, %c0_6] : memref<1x32x16xf32, #tpu.memory_space<vmem>>, vector<1x32x16xf32>
    %5 = vector.shape_cast %4 : vector<1x32x16xf32> to vector<32x16xf32>
    %6 = vector.shape_cast %3 : vector<32x16xf32> to vector<1x32x16xf32>
    tpu.vector_store %arg4[%c0_4, %c0_5, %c0_6], %6 {strides = array<i32>} : memref<1x32x16xf32, #tpu.memory_space<vmem>>, vector<1x32x16xf32>,
    return
  }
  func.func @transform_0(%arg0: i32, %arg1: i32) -> (i32, i32) {
    %c0_i32 = arith.constant 0 : i32
    %c0_i32_0 = arith.constant 0 : i32
    %c0_i32_1 = arith.constant 0 : i32
    return %c0_i32, %c0_i32_0 : i32, i32
  }
  func.func @transform_1(%arg0: i32, %arg1: i32) -> (i32, i32, i32) {
    %c0_i32 = arith.constant 0 : i32
    %c0_i32_0 = arith.constant 0 : i32
    return %arg0, %c0_i32, %arg1 : i32, i32, i32
  }
  func.func @transform_2(%arg0: i32, %arg1: i32) -> (i32, i32, i32) {
    %c0_i32 = arith.constant 0 : i32
    %c0_i32_0 = arith.constant 0 : i32
    return %arg0, %c0_i32, %arg1 : i32, i32, i32
  }
}

</mosaic_0001>

<bundles_post_ra>
// kernel: simple_gc.1
= control target key start
LH: loop header
LB: loop body
LE: loop exit
PB: predicated region body
PF: predicated region fallthrough
CT: control target
= control target key end

     0   :  { %7 = vsyncpa [#allocation3], 0  ;;  %s703_s0 = inlined_call_operand.vmem [shape: f32[32,32], index: 0, kind: input, shape index: {}]   ;;  %s704_s1 = inlined_call_operand.vmem [shape: f32[2,32,16], index: 1, kind: input, shape index: {}]   ;;  %s705_s2 = inlined_call_operand.hbm [shape: f32[2,32,16], index: 2, kind: output, shape index: {}]  }
   0x1   :  { %9 = vsyncpa [#allocation3 + $0x1], 0  ;;  %s573_s9 = smov 0   ;;  %s575_s10 = smov 0  }
   0x2   :  { %s577_s11 = smov 0   ;;  %s579_s12 = smov 0  }
   0x3   :  { %s581_s13 = smov 0   ;;  %s583_s14 = smov 0  }
   0x4 LB: > { %s371_s15 = sadd.s32 4294967295, %s553_s14   ;;  %s372_s16 = sadd.s32 4294967294, %s553_s14   ;;  %s553_s14 = sphi %s583_s14, %s15_s14   ;;  %s549_s13 = sphi %s581_s13, %s712_s13   ;;  %s545_s12 = sphi %s579_s12, %s711_s12   ;;  %s541_s11 = sphi %s577_s11, %s710_s11   ;;  %s537_s10 = sphi %s575_s10, %s709_s10   ;;  %s533_s9 = sphi %s573_s9, %s708_s9  }
   0x5   : > { %s27_s17 = sadd.s32 1, %s549_s13  ;;  %s85_s18 = sadd.s32 1, %s541_s11 }
   0x6   : > { %p29_p0 = scmp.ge.s32.totalorder %s27_s17, 2  ;;  %p95_p1 = scmp.ne.s32.totalorder %s541_s11, %s537_s10 }
   0x7   : > { %p96_p2 = scmp.eq.s32.totalorder %s371_s15, 1  ;;  %p101_p3 = scmp.ne.s32.totalorder %s537_s10, %s533_s9 }
   0x8   : > { %s714_s17 = smov (%p29_p0, %s27_s17), 0  ;;  %p102_p5 = scmp.eq.s32.totalorder %s372_s16, 1 }
   0x9   : > { %p613_p4 = por %p96_p2, %p95_p1  ;;  %s80_s20 = ssub.s32 %s549_s13, %s714_s17 }
   0xa   : > { %p375_p6 = scmp.ge.s32.totalorder %s553_s14, 1  ;;  %p83_p7 = scmp.eq.s32.totalorder %s80_s20, 0 }
   0xb   : > { %p620_p8 = por %p102_p5, %p101_p3  ;;  %p134_p9 = scmp.lt.s32.totalorder %s553_s14, 3 }
   0xc   : > { %s626_s22 = scalar_select %p83_p7, %s541_s11, %s85_s18  }
   0xd   : > { %p135_p10 = pnand %p375_p6, %p134_p9 }
   0xe   : > { %p159_p11 = scmp.lt.s32.totalorder (!%p135_p10), %s545_s12, 1  ;;  %s156_s8 = sand.u32 (!%p135_p10), 1, %s537_s10  }
   0xf   : > { %138 = sbr.rel (%p135_p10) target bundleno = 242 (0xf2), region = 28  ;;  %s376_s15 = sshll.u32 (!%p135_p10), %s156_s8, 5 }
  0x10   : > { %s158_s16 = scalar_lea.vmem (!%p135_p10), [#allocation2], %s376_s15  ;;  %s389_s20 = sshll.u32 (!%p135_p10), %s545_s12, 9 }
  0x11   : > { %s293_s18 = sshll.u32 (!%p135_p10), %s158_s16, 4  ;;  %s656_s25 = scalar_lea.hbm (!%p135_p10), %s705_s2, %s389_s20  ;;  %s651_s18 = int_to_ptr.vmem [resolvable:$true] %s293_s18 }
  0x12   : > { %s477_s26 = scalar_lea.vmem (!%p135_p10), %s651_s18, 512 }
  0x13   : > { %p478_p12 = scmp.ne.s32.totalorder (!%p135_p10), %s651_s18, %s477_s26 }
  0x14   : > { %v167_v0 = vld [vmem:[%s703_s0] sm:$0xff]  ;;  %vm175_vm0 = vcmask 261120   ;;  %v169_v1 = vld [vmem:[%s703_s0 + $0x10] sm:$0xff]  ;;  %s160_s27 = scalar_select %p159_p11, %s545_s12, 1  ;;  %v168_v6 = vld [vmem:[%s703_s0 + $0x8] sm:$0xff]  ;;  %vm273_vm1 = vcmask 130048  }
  0x15   : > { %406 = vmatprep.mubr.msk.f32.mxu0 %vm175_vm0, %v167_v0  ;;  %409 = vmatprep.mubr.msk.f32.mxu1 %vm175_vm0, %v169_v1  ;;  %v170_v7 = vld [vmem:[%s703_s0 + $0x18] sm:$0xff]  ;;  %s658_s12 = scalar_lea.sflag [#allocation3], %s156_s8  ;;  %p479_p13 = pnand %p478_p12, %p613_p4 }
  0x16   : > { %s388_s28 = sshll.u32 %s160_s27, 5  ;;  %s555_s27 = smov [#allocation2]  }
  0x17   : > { %s166_s3 = scalar_lea.vmem %s704_s1, %s388_s28  ;;  %p480_p0 = pneg %p479_p13 }
  0x18   : > { %v174_v2 = vld [vmem:[%s166_s3 + $0x18] sm:$0xff]  ;;  %v173_v3 = vld [vmem:[%s166_s3 + $0x10] sm:$0xff]  ;;  %v172_v4 = vld [vmem:[%s166_s3 + $0x8] sm:$0xff]  ;;  %s481_s28 = sshll.u32 %s555_s27, 4  ;;  %s482_s28 = int_to_ptr.vmem [resolvable:$false] %s481_s28 }
  0x19   : > { %398 = vmatprep.subr.mxu0 %v174_v2  ;;  %412 = vmatprep.subr.mxu1 %v174_v2  ;;  %v171_v5 = vld [vmem:[%s166_s3] sm:$0xff]  ;;  %s483_s29 = scalar_lea.vmem %s482_s28, 1024  ;;  %p484_p1 = scmp.lt.s32.totalorder %s651_s18, %s482_s28 }
  0x1a   : > { %399 = vmatpush3.msra.mxu0 %v174_v2  ;;  %416 = vmatpush3.msra.mxu1 %v174_v2  ;;  %p485_p2 = scmp.lt.s32.totalorder %s483_s29, %s477_s26 }
  0x1b   : > { %400 = vmatprep.subr.mxu0 %v173_v3  ;;  %413 = vmatprep.subr.mxu1 %v173_v3 }
  0x1c   : > { %401 = vmatpush3.msra.mxu0 %v173_v3  ;;  %417 = vmatpush3.msra.mxu1 %v173_v3  ;;  %p486_p3 = por %p485_p2, %p484_p1 }
  0x1d   : > { %402 = vmatprep.subr.mxu0 %v172_v4  ;;  %414 = vmatprep.subr.mxu1 %v172_v4 }
  0x1e   : > { %403 = vmatpush3.msra.mxu0 %v172_v4  ;;  %418 = vmatpush3.msra.mxu1 %v172_v4  ;;  %p487_p5 = pnand %p486_p3, %p480_p0 }
  0x1f   : > { %404 = vmatprep.subr.mxu0 %v171_v5  ;;  %415 = vmatprep.subr.mxu1 %v171_v5 }
  0x20   : > { %405 = vmatpush3.msra.mxu0 %v171_v5  ;;  %419 = vmatpush3.msra.mxu1 %v171_v5 }
  0x21   : > { %407 = vmatmul.mubr.msk.f32.vlgmr.msra.gmra.mxu0 %vm175_vm0, %v168_v6  ;;  %410 = vmatmul.mubr.msk.f32.vlgmr.msra.gmra.mxu1 %vm175_vm0, %v170_v7 }
  0xe1   : > { %v408_v8 = vpop.f32.mrf.mxu0  ;;  %v411_v9 = vpop.f32.mrf.mxu1 }
  0xe2   : > { %275 = vst.msk [vmem:[%s158_s16 + $0x8] sm:$0xff] %vm273_vm1, %v408_v8  ;;  %277 = vst.msk [vmem:[%s158_s16 + $0x18] sm:$0xff] %vm273_vm1, %v411_v9 }
  0xe3   : > { %v254_v10 = vpop.f32.mrf.mxu0  ;;  %v264_v11 = vpop.f32.mrf.mxu1 }
  0xe4   : > { %274 = vst.msk [vmem:[%s158_s16] sm:$0xff] %vm273_vm1, %v254_v10  ;;  %276 = vst.msk [vmem:[%s158_s16 + $0x10] sm:$0xff] %vm273_vm1, %v264_v11 }
  0xe5   : > { %490 = shalt.err (!%p487_p5)
}
  0xe6   : > { %s491_s30 = scalar_lea.hbm %s656_s25, 512  ;;  %s495_s5 = scalar_lea.hbm %s705_s2, 1024 }
  0xe7   : > { %p492_p6 = scmp.ne.s32.totalorder %s656_s25, %s491_s30  ;;  %p496_p10 = scmp.lt.s32.totalorder %s656_s25, %s705_s2 }
  0xe8   : > { %p497_p11 = scmp.lt.s32.totalorder %s495_s5, %s491_s30 }
  0xe9   : > { %p493_p7 = pnand %p492_p6, %p613_p4 }
  0xea   : > { %p498_p12 = por %p497_p11, %p496_p10 }
  0xeb   : > { %p494_p9 = pneg %p493_p7 }
  0xed   : > { %p499_p13 = pnand %p498_p12, %p494_p9 }
  0xef   : > { %502 = shalt.err (!%p499_p13)
}
  0xf0   : > { %s556_s8 = smov 128   ;;  %s557_s15 = smov 8  }
  0xf1   : > { %420 = dma.vmem_to_hbm [thread:$0]  (%p613_p4), %s651_s18, 512, %s656_s25, %s658_s12, %s556_s8, %s556_s8, %s557_s15  }
  0xf2 PF: > { %p426_p0 = scmp.ge.s32.totalorder %s553_s14, 2  ;;  %s308_s16 = sand.u32 1, %s533_s9  }
  0xf3   : > { %s309_s20 = scalar_lea.sflag [#allocation3], %s308_s16 }
  0xf4   : > { %p423_p1 = pnand %p426_p0, %p620_p8 }
  0xf6   : > { %p424_p2 = pneg %p423_p1 }
  0xf8   : > { %528 = dma.done.wait (%p424_p2), %s309_s20, 512  }
  0xf9   : > { %530 = vsyncadd (%p424_p2), %s309_s20, 4294966784  ;;  %s15_s14 = sadd.s32 1, %s553_s14   ;;  %s708_s9 = smov %s537_s10 }
  0xfa   : > { %p12_p3 = scmp.ge.s32.totalorder %s15_s14, 4   ;;  %s709_s10 = smov %s541_s11 }
  0xfb   : > { %s710_s11 = smov %s626_s22  ;;  %s711_s12 = smov %s549_s13 }
  0xfc   : > { %s712_s13 = smov %s714_s17  ;;  %14 = sbr.rel (!%p12_p3) target bundleno = 4 (0x4), region = 63 }
 0x101   :  { %314 = vsyncpa [#allocation3], 1 }
 0x102   :  { %316 = vsyncpa [#allocation3 + $0x1], 1 }

</bundles_post_ra>
